<compile_context>
chip_gen: v5e
topology: v5e:2x2
jax: 0.10.0
libtpu: 0.0.40
codegen_flags: <defaults>
</compile_context>

<pallas_src>
import jax
import jax.numpy as jnp
from jax.experimental import pallas as pl
from jax.experimental.pallas import tpu as pltpu

INPUT_NUM = 28 * 28
H1 = 16
H2 = 16
OUTPUT_NUM = 10


def mlp_softmax_kernel(x_ref, w1_ref, b1_ref, w2_ref, b2_ref, w3_ref, b3_ref, o_ref):
    # One batch tile per grid step: three MXU matmuls, ReLU on the VPU,
    # numerically-stable softmax (EUP exp + XLU row reduce + exact divide).
    x = x_ref[...]                                                     # (TB, 784)

    h1 = jnp.dot(x, w1_ref[...], preferred_element_type=jnp.float32) + b1_ref[...]
    h1 = jnp.maximum(h1, 0.0)                                          # (TB, 16)

    h2 = jnp.dot(h1, w2_ref[...], preferred_element_type=jnp.float32) + b2_ref[...]
    h2 = jnp.maximum(h2, 0.0)                                          # (TB, 16)

    logits = jnp.dot(h2, w3_ref[...], preferred_element_type=jnp.float32) + b3_ref[...]  # (TB, 10)

    # Softmax over dim=1 (the feature axis), matching nn.Softmax(dim=1).
    # Exact divide: rows sum to 1 up to f32 rounding, and the cost is hidden
    # under the x-tile DMA (this kernel is HBM-bandwidth bound on x).
    m = jnp.max(logits, axis=1, keepdims=True)
    e = jnp.exp(logits - m)
    denom = jnp.sum(e, axis=1, keepdims=True)
    o_ref[...] = (e / denom).astype(o_ref.dtype)


def _round_up(n, m):
    return ((n + m - 1) // m) * m


def model_forward(x, params, tile_b=1024):
    """x: (B, 28, 28) float32.  Returns (B, 10) softmax probabilities."""
    w1, b1, w2, b2, w3, b3 = params
    B = x.shape[0]
    x_flat = x.reshape(B, -1).astype(jnp.float32)                      # nn.Flatten

    # Batch tile: large enough to amortize the ~0.35 us per-step overhead,
    # small enough (double-buffered) for every generation's default scoped VMEM.
    TB = min(_round_up(tile_b, 8), _round_up(B, 8))
    B_pad = _round_up(B, TB)
    if B_pad != B:
        x_flat = jnp.pad(x_flat, ((0, B_pad - B), (0, 0)))             # pad rows -> sliced off below

    # Kernel takes weights as (in, out): transpose PyTorch-layout weights once
    # in the wrapper (never inside the grid loop).
    w1_t = w1.T.astype(jnp.float32)            # (784, 16)
    w2_t = w2.T.astype(jnp.float32)            # (16, 16)
    w3_t = w3.T.astype(jnp.float32)            # (16, 10)
    b1_2d = b1.reshape(1, H1).astype(jnp.float32)
    b2_2d = b2.reshape(1, H2).astype(jnp.float32)
    b3_2d = b3.reshape(1, OUTPUT_NUM).astype(jnp.float32)

    grid = (B_pad // TB,)

    out = pl.pallas_call(
        mlp_softmax_kernel,
        out_shape=jax.ShapeDtypeStruct((B_pad, OUTPUT_NUM), jnp.float32),
        grid=grid,
        in_specs=[
            # x: streamed per batch tile (auto double-buffered DMA).
            pl.BlockSpec((TB, INPUT_NUM), lambda i: (i, 0)),
            # weights / biases: constant block index -> VMEM-resident across grid.
            pl.BlockSpec((INPUT_NUM, H1), lambda i: (0, 0)),
            pl.BlockSpec((1, H1), lambda i: (0, 0)),
            pl.BlockSpec((H1, H2), lambda i: (0, 0)),
            pl.BlockSpec((1, H2), lambda i: (0, 0)),
            pl.BlockSpec((H2, OUTPUT_NUM), lambda i: (0, 0)),
            pl.BlockSpec((1, OUTPUT_NUM), lambda i: (0, 0)),
        ],
        out_specs=pl.BlockSpec((TB, OUTPUT_NUM), lambda i: (i, 0)),
        compiler_params=pltpu.CompilerParams(
            dimension_semantics=("parallel",),   # megacore sharding on v7x
        ),
    )(x_flat, w1_t, b1_2d, w2_t, b2_2d, w3_t, b3_2d)

    return out[:B]


def init_params(key):
    """Deterministic init mimicking PyTorch's default Linear init
    (uniform(-1/sqrt(fan_in), 1/sqrt(fan_in)) for both weight and bias).
    Weights stored in PyTorch layout (out_features, in_features)."""
    def linear_init(k, fan_in, fan_out):
        kw, kb = jax.random.split(k)
        bound = 1.0 / (fan_in ** 0.5)
        w = jax.random.uniform(kw, (fan_out, fan_in), jnp.float32, -bound, bound)
        b = jax.random.uniform(kb, (fan_out,), jnp.float32, -bound, bound)
        return w, b

    k1, k2, k3 = jax.random.split(key, 3)
    w1, b1 = linear_init(k1, INPUT_NUM, H1)
    w2, b2 = linear_init(k2, H1, H2)
    w3, b3 = linear_init(k3, H2, OUTPUT_NUM)
    return (w1, b1, w2, b2, w3, b3)


def reference_forward(x, params):
    """Pure-JAX reference matching the PyTorch forward exactly."""
    w1, b1, w2, b2, w3, b3 = params
    x = x.reshape(x.shape[0], -1)
    h = jnp.maximum(x @ w1.T + b1, 0.0)
    h = jnp.maximum(h @ w2.T + b2, 0.0)
    logits = h @ w3.T + b3
    return jax.nn.softmax(logits, axis=1)


if __name__ == "__main__":
    key = jax.random.PRNGKey(0)
    k_params, k_x = jax.random.split(key)

    params = init_params(k_params)

    # Primary small-shape check: batch=2, 28x28 "digits".
    x = jax.random.normal(k_x, (2, 28, 28), dtype=jnp.float32)
    out = jax.block_until_ready(model_forward(x, params))
    ref = reference_forward(x, params)
    assert out.shape == (2, OUTPUT_NUM)
    assert jnp.allclose(out, ref, atol=1e-4, rtol=1e-4), "mismatch vs reference (B=2)"
    assert jnp.allclose(jnp.sum(out, axis=1), 1.0, atol=1e-3), "softmax rows must sum to ~1"

    # Secondary check exercising multi-tile grid + batch padding path.
    x2 = jax.random.normal(jax.random.PRNGKey(7), (96, 28, 28), dtype=jnp.float32)
    out2 = jax.block_until_ready(model_forward(x2, params, tile_b=32))
    ref2 = reference_forward(x2, params)
    assert out2.shape == (96, OUTPUT_NUM)
    assert jnp.allclose(out2, ref2, atol=1e-4, rtol=1e-4), "mismatch vs reference (tiled)"
    assert jnp.allclose(jnp.sum(out2, axis=1), 1.0, atol=1e-3), "softmax rows must sum to ~1 (tiled)"

    print("KERNEL_OK")
</pallas_src>

<mosaic_0001>
module attributes {stable_mosaic.version = 11 : i64} {
  func.func @mlp_softmax_kernel(%arg0: i32, %arg1: memref<8x784xf32, #tpu.memory_space<vmem>>, %arg2: memref<784x16xf32, #tpu.memory_space<vmem>>, %arg3: memref<1x16xf32, #tpu.memory_space<vmem>>, %arg4: memref<16x16xf32, #tpu.memory_space<vmem>>, %arg5: memref<1x16xf32, #tpu.memory_space<vmem>>, %arg6: memref<16x10xf32, #tpu.memory_space<vmem>>, %arg7: memref<1x10xf32, #tpu.memory_space<vmem>>, %arg8: memref<8x10xf32, #tpu.memory_space<vmem>>) attributes {dimension_semantics = [#tpu.dimension_semantics<parallel>], iteration_bounds = array<i64: 1>, scalar_prefetch = 0 : i64, scratch_operands = 0 : i64, tpu.core_type = #tpu.core_type<tc>, window_params = [{transform_indices = @transform_0, window_bounds = array<i64: 8, 784>}, {pipeline_mode = #tpu.pipeline_mode<synchronous>, transform_indices = @transform_1, window_bounds = array<i64: 784, 16>}, {pipeline_mode = #tpu.pipeline_mode<synchronous>, transform_indices = @transform_2, window_bounds = array<i64: 1, 16>}, {pipeline_mode = #tpu.pipeline_mode<synchronous>, transform_indices = @transform_3, window_bounds = array<i64: 16, 16>}, {pipeline_mode = #tpu.pipeline_mode<synchronous>, transform_indices = @transform_4, window_bounds = array<i64: 1, 16>}, {pipeline_mode = #tpu.pipeline_mode<synchronous>, transform_indices = @transform_5, window_bounds = array<i64: 16, 10>}, {pipeline_mode = #tpu.pipeline_mode<synchronous>, transform_indices = @transform_6, window_bounds = array<i64: 1, 10>}, {transform_indices = @transform_7, window_bounds = array<i64: 8, 10>}]} {
    %c0 = arith.constant 0 : index
    %c0_0 = arith.constant 0 : index
    %0 = vector.load %arg1[%c0, %c0_0] : memref<8x784xf32, #tpu.memory_space<vmem>>, vector<8x784xf32>
    %c0_1 = arith.constant 0 : index
    %c0_2 = arith.constant 0 : index
    %1 = vector.load %arg2[%c0_1, %c0_2] : memref<784x16xf32, #tpu.memory_space<vmem>>, vector<784x16xf32>
    %cst = arith.constant dense<0.000000e+00> : vector<8x16xf32>
    %2 = tpu.matmul %0, %1, %cst {dimension_numbers = #tpu.dot_dimension_numbers<[1], [0], [0], [1], [0, 0, 1, 1], [], []>} : vector<8x784xf32>, vector<784x16xf32>, vector<8x16xf32> -> vector<8x16xf32>
    %c0_3 = arith.constant 0 : index
    %c0_4 = arith.constant 0 : index
    %3 = vector.load %arg3[%c0_3, %c0_4] : memref<1x16xf32, #tpu.memory_space<vmem>>, vector<1x16xf32>
    %4 = vector.broadcast %3 : vector<1x16xf32> to vector<8x16xf32>
    %5 = arith.addf %2, %4 : vector<8x16xf32>
    %cst_5 = arith.constant 0.000000e+00 : f32
    %6 = vector.broadcast %cst_5 : f32 to vector<8x16xf32>
    %7 = arith.maximumf %5, %6 : vector<8x16xf32>
    %c0_6 = arith.constant 0 : index
    %c0_7 = arith.constant 0 : index
    %8 = vector.load %arg4[%c0_6, %c0_7] : memref<16x16xf32, #tpu.memory_space<vmem>>, vector<16x16xf32>
    %cst_8 = arith.constant dense<0.000000e+00> : vector<8x16xf32>
    %9 = tpu.matmul %7, %8, %cst_8 {dimension_numbers = #tpu.dot_dimension_numbers<[1], [0], [0], [1], [0, 0, 1, 1], [], []>} : vector<8x16xf32>, vector<16x16xf32>, vector<8x16xf32> -> vector<8x16xf32>
    %c0_9 = arith.constant 0 : index
    %c0_10 = arith.constant 0 : index
    %10 = vector.load %arg5[%c0_9, %c0_10] : memref<1x16xf32, #tpu.memory_space<vmem>>, vector<1x16xf32>
    %11 = vector.broadcast %10 : vector<1x16xf32> to vector<8x16xf32>
    %12 = arith.addf %9, %11 : vector<8x16xf32>
    %cst_11 = arith.constant 0.000000e+00 : f32
    %13 = vector.broadcast %cst_11 : f32 to vector<8x16xf32>
    %14 = arith.maximumf %12, %13 : vector<8x16xf32>
    %c0_12 = arith.constant 0 : index
    %c0_13 = arith.constant 0 : index
    %15 = vector.load %arg6[%c0_12, %c0_13] : memref<16x10xf32, #tpu.memory_space<vmem>>, vector<16x10xf32>
    %cst_14 = arith.constant dense<0.000000e+00> : vector<8x10xf32>
    %16 = tpu.matmul %14, %15, %cst_14 {dimension_numbers = #tpu.dot_dimension_numbers<[1], [0], [0], [1], [0, 0, 1, 1], [], []>} : vector<8x16xf32>, vector<16x10xf32>, vector<8x10xf32> -> vector<8x10xf32>
    %c0_15 = arith.constant 0 : index
    %c0_16 = arith.constant 0 : index
    %17 = vector.load %arg7[%c0_15, %c0_16] : memref<1x10xf32, #tpu.memory_space<vmem>>, vector<1x10xf32>
    %18 = vector.broadcast %17 : vector<1x10xf32> to vector<8x10xf32>
    %19 = arith.addf %16, %18 : vector<8x10xf32>
    %cst_17 = arith.constant dense<0xFF800000> : vector<8xf32>
    %20 = vector.multi_reduction <maximumf>, %19, %cst_17 [1] : vector<8x10xf32> to vector<8xf32>
    %21 = vector.shape_cast %20 : vector<8xf32> to vector<8x1xf32>
    %22 = vector.broadcast %21 : vector<8x1xf32> to vector<8x10xf32>
    %23 = arith.subf %19, %22 : vector<8x10xf32>
    %24 = math.exp %23 : vector<8x10xf32>
    %cst_18 = arith.constant dense<0.000000e+00> : vector<8xf32>
    %25 = vector.multi_reduction <add>, %24, %cst_18 [1] : vector<8x10xf32> to vector<8xf32>
    %26 = vector.shape_cast %25 : vector<8xf32> to vector<8x1xf32>
    %27 = vector.broadcast %26 : vector<8x1xf32> to vector<8x10xf32>
    %28 = arith.divf %24, %27 : vector<8x10xf32>
    %c0_19 = arith.constant 0 : index
    %c0_20 = arith.constant 0 : index
    %29 = vector.load %arg8[%c0_19, %c0_20] : memref<8x10xf32, #tpu.memory_space<vmem>>, vector<8x10xf32>
    tpu.vector_store %arg8[%c0_19, %c0_20], %28 {strides = array<i32>} : memref<8x10xf32, #tpu.memory_space<vmem>>, vector<8x10xf32>,
    return
  }
  func.func @transform_0(%arg0: i32) -> (i32, i32) {
    %c0_i32 = arith.constant 0 : i32
    %c0_i32_0 = arith.constant 0 : i32
    return %arg0, %c0_i32 : i32, i32
  }
  func.func @transform_1(%arg0: i32) -> (i32, i32) {
    %c0_i32 = arith.constant 0 : i32
    %c0_i32_0 = arith.constant 0 : i32
    %c0_i32_1 = arith.constant 0 : i32
    return %c0_i32, %c0_i32_0 : i32, i32
  }
  func.func @transform_2(%arg0: i32) -> (i32, i32) {
    %c0_i32 = arith.constant 0 : i32
    %c0_i32_0 = arith.constant 0 : i32
    %c0_i32_1 = arith.constant 0 : i32
    return %c0_i32, %c0_i32_0 : i32, i32
  }
  func.func @transform_3(%arg0: i32) -> (i32, i32) {
    %c0_i32 = arith.constant 0 : i32
    %c0_i32_0 = arith.constant 0 : i32
    %c0_i32_1 = arith.constant 0 : i32
    return %c0_i32, %c0_i32_0 : i32, i32
  }
  func.func @transform_4(%arg0: i32) -> (i32, i32) {
    %c0_i32 = arith.constant 0 : i32
    %c0_i32_0 = arith.constant 0 : i32
    %c0_i32_1 = arith.constant 0 : i32
    return %c0_i32, %c0_i32_0 : i32, i32
  }
  func.func @transform_5(%arg0: i32) -> (i32, i32) {
    %c0_i32 = arith.constant 0 : i32
    %c0_i32_0 = arith.constant 0 : i32
    %c0_i32_1 = arith.constant 0 : i32
    return %c0_i32, %c0_i32_0 : i32, i32
  }
  func.func @transform_6(%arg0: i32) -> (i32, i32) {
    %c0_i32 = arith.constant 0 : i32
    %c0_i32_0 = arith.constant 0 : i32
    %c0_i32_1 = arith.constant 0 : i32
    return %c0_i32, %c0_i32_0 : i32, i32
  }
  func.func @transform_7(%arg0: i32) -> (i32, i32) {
    %c0_i32 = arith.constant 0 : i32
    %c0_i32_0 = arith.constant 0 : i32
    return %arg0, %c0_i32 : i32, i32
  }
}

</mosaic_0001>

<bundles_post_ra>
// kernel: tpu_custom_call.1
= control target key start
LH: loop header
LB: loop body
LE: loop exit
PB: predicated region body
PF: predicated region fallthrough
CT: control target
= control target key end

     0   :  { %s805_s0 = inlined_call_operand.vmem [shape: f32[8,784], index: 0, kind: input, shape index: {}]   ;;  %s806_s1 = inlined_call_operand.vmem [shape: f32[784,16], index: 1, kind: input, shape index: {}]   ;;  %s807_s2 = inlined_call_operand.vmem [shape: f32[1,16], index: 2, kind: input, shape index: {}]   ;;  %s808_s3 = inlined_call_operand.vmem [shape: f32[16,16], index: 3, kind: input, shape index: {}]   ;;  %s809_s4 = inlined_call_operand.vmem [shape: f32[1,16], index: 4, kind: input, shape index: {}]   ;;  %s810_s5 = inlined_call_operand.vmem [shape: f32[16,10], index: 5, kind: input, shape index: {}]   ;;  %s811_s6 = inlined_call_operand.vmem [shape: f32[1,10], index: 6, kind: input, shape index: {}]   ;;  %s812_s7 = inlined_call_operand.hbm [shape: f32[8,10], index: 7, kind: output, shape index: {}]  }
   0x1   :  { %v49_v0 = vld [vmem:[%s806_s1 + $0x78] sm:$0xff]  ;;  %v48_v1 = vld [vmem:[%s806_s1 + $0x70] sm:$0xff]  ;;  %v47_v4 = vld [vmem:[%s806_s1 + $0x68] sm:$0xff] }
   0x2   :  { %v65_v2 = vld [vmem:[%s806_s1 + $0xf8] sm:$0xff]  ;;  %140 = vmatpush.msra.mxu0 %v49_v0  ;;  %v64_v3 = vld [vmem:[%s806_s1 + $0xf0] sm:$0xff]  ;;  %v63_v5 = vld [vmem:[%s806_s1 + $0xe8] sm:$0xff] }
   0x3   :  { %160 = vmatpush.msra.mxu1 %v65_v2  ;;  %v46_v6 = vld [vmem:[%s806_s1 + $0x60] sm:$0xff]  ;;  %v45_v8 = vld [vmem:[%s806_s1 + $0x58] sm:$0xff]  ;;  %v44_v10 = vld [vmem:[%s806_s1 + $0x50] sm:$0xff] }
   0x4   :  { %141 = vmatpush.msra.mxu0 %v48_v1  ;;  %v62_v7 = vld [vmem:[%s806_s1 + $0xe0] sm:$0xff]  ;;  %v61_v9 = vld [vmem:[%s806_s1 + $0xd8] sm:$0xff]  ;;  %v60_v12 = vld [vmem:[%s806_s1 + $0xd0] sm:$0xff] }
   0x5   :  { %161 = vmatpush.msra.mxu1 %v64_v3  ;;  %v81_v11 = vld [vmem:[%s806_s1 + $0x178] sm:$0xff]  ;;  %v80_v13 = vld [vmem:[%s806_s1 + $0x170] sm:$0xff]  ;;  %v79_v15 = vld [vmem:[%s806_s1 + $0x168] sm:$0xff] }
   0x6   :  { %142 = vmatpush.msra.mxu0 %v47_v4  ;;  %180 = vmatpush.msra.mxu2 %v81_v11  ;;  %v97_v14 = vld [vmem:[%s806_s1 + $0x1f8] sm:$0xff]  ;;  %v96_v16 = vld [vmem:[%s806_s1 + $0x1f0] sm:$0xff]  ;;  %v43_v17 = vld [vmem:[%s806_s1 + $0x48] sm:$0xff] }
   0x7   :  { %162 = vmatpush.msra.mxu1 %v63_v5  ;;  %v59_v18 = vld [vmem:[%s806_s1 + $0xc8] sm:$0xff]  ;;  %200 = vmatpush.msra.mxu3 %v97_v14  ;;  %v78_v19 = vld [vmem:[%s806_s1 + $0x160] sm:$0xff]  ;;  %v77_v23 = vld [vmem:[%s806_s1 + $0x158] sm:$0xff] }
   0x8   :  { %143 = vmatpush.msra.mxu0 %v46_v6  ;;  %181 = vmatpush.msra.mxu2 %v80_v13  ;;  %v95_v20 = vld [vmem:[%s806_s1 + $0x1e8] sm:$0xff]  ;;  %v42_v21 = vld [vmem:[%s806_s1 + $0x40] sm:$0xff]  ;;  %v41_v25 = vld [vmem:[%s806_s1 + $0x38] sm:$0xff] }
   0x9   :  { %163 = vmatpush.msra.mxu1 %v62_v7  ;;  %v58_v22 = vld [vmem:[%s806_s1 + $0xc0] sm:$0xff]  ;;  %201 = vmatpush.msra.mxu3 %v96_v16  ;;  %v57_v26 = vld [vmem:[%s806_s1 + $0xb8] sm:$0xff]  ;;  %v76_v27 = vld [vmem:[%s806_s1 + $0x150] sm:$0xff] }
   0xa   :  { %144 = vmatpush.msra.mxu0 %v45_v8  ;;  %182 = vmatpush.msra.mxu2 %v79_v15  ;;  %v94_v24 = vld [vmem:[%s806_s1 + $0x1e0] sm:$0xff]  ;;  %v93_v28 = vld [vmem:[%s806_s1 + $0x1d8] sm:$0xff]  ;;  %v40_v29 = vld [vmem:[%s806_s1 + $0x30] sm:$0xff] }
   0xb   :  { %164 = vmatpush.msra.mxu1 %v61_v9  ;;  %202 = vmatpush.msra.mxu3 %v95_v20  ;;  %v56_v30 = vld [vmem:[%s806_s1 + $0xb0] sm:$0xff]  ;;  %v75_v31 = vld [vmem:[%s806_s1 + $0x148] sm:$0xff]  ;;  %v74_v35 = vld [vmem:[%s806_s1 + $0x140] sm:$0xff] }
   0xc   :  { %145 = vmatpush.msra.mxu0 %v44_v10  ;;  %183 = vmatpush.msra.mxu2 %v78_v19  ;;  %v92_v32 = vld [vmem:[%s806_s1 + $0x1d0] sm:$0xff]  ;;  %v39_v33 = vld [vmem:[%s806_s1 + $0x28] sm:$0xff]  ;;  %v38_v37 = vld [vmem:[%s806_s1 + $0x20] sm:$0xff] }
   0xd   :  { %165 = vmatpush.msra.mxu1 %v60_v12  ;;  %203 = vmatpush.msra.mxu3 %v94_v24  ;;  %v55_v34 = vld [vmem:[%s806_s1 + $0xa8] sm:$0xff]  ;;  %v54_v38 = vld [vmem:[%s806_s1 + $0xa0] sm:$0xff]  ;;  %v73_v39 = vld [vmem:[%s806_s1 + $0x138] sm:$0xff] }
   0xe   :  { %146 = vmatpush.msra.mxu0 %v43_v17  ;;  %184 = vmatpush.msra.mxu2 %v77_v23  ;;  %v91_v36 = vld [vmem:[%s806_s1 + $0x1c8] sm:$0xff]  ;;  %v90_v40 = vld [vmem:[%s806_s1 + $0x1c0] sm:$0xff]  ;;  %v37_v41 = vld [vmem:[%s806_s1 + $0x18] sm:$0xff] }
   0xf   :  { %166 = vmatpush.msra.mxu1 %v59_v18  ;;  %204 = vmatpush.msra.mxu3 %v93_v28  ;;  %v53_v42 = vld [vmem:[%s806_s1 + $0x98] sm:$0xff]  ;;  %v72_v43 = vld [vmem:[%s806_s1 + $0x130] sm:$0xff]  ;;  %v71_v47 = vld [vmem:[%s806_s1 + $0x128] sm:$0xff] }
  0x10   :  { %147 = vmatpush.msra.mxu0 %v42_v21  ;;  %185 = vmatpush.msra.mxu2 %v76_v27  ;;  %v89_v44 = vld [vmem:[%s806_s1 + $0x1b8] sm:$0xff]  ;;  %v36_v45 = vld [vmem:[%s806_s1 + $0x10] sm:$0xff]  ;;  %v35_v49 = vld [vmem:[%s806_s1 + $0x8] sm:$0xff] }
  0x11   :  { %167 = vmatpush.msra.mxu1 %v58_v22  ;;  %205 = vmatpush.msra.mxu3 %v92_v32  ;;  %v52_v46 = vld [vmem:[%s806_s1 + $0x90] sm:$0xff]  ;;  %v51_v50 = vld [vmem:[%s806_s1 + $0x88] sm:$0xff]  ;;  %v70_v51 = vld [vmem:[%s806_s1 + $0x120] sm:$0xff] }
  0x12   :  { %148 = vmatpush.msra.mxu0 %v41_v25  ;;  %186 = vmatpush.msra.mxu2 %v75_v31  ;;  %v88_v48 = vld [vmem:[%s806_s1 + $0x1b0] sm:$0xff]  ;;  %v87_v52 = vld [vmem:[%s806_s1 + $0x1a8] sm:$0xff]  ;;  %v34_v53 = vld [vmem:[%s806_s1] sm:$0xff] }
  0x13   :  { %168 = vmatpush.msra.mxu1 %v57_v26  ;;  %206 = vmatpush.msra.mxu3 %v91_v36  ;;  %v50_v54 = vld [vmem:[%s806_s1 + $0x80] sm:$0xff]  ;;  %v113_v55 = vld [vmem:[%s806_s1 + $0x278] sm:$0xff]  ;;  %v112_v59 = vld [vmem:[%s806_s1 + $0x270] sm:$0xff] }
  0x14   :  { %149 = vmatpush.msra.mxu0 %v40_v29  ;;  %187 = vmatpush.msra.mxu2 %v74_v35  ;;  %v129_v56 = vld [vmem:[%s806_s1 + $0x2f8] sm:$0xff]  ;;  %v86_v58 = vld [vmem:[%s806_s1 + $0x1a0] sm:$0xff]  ;;  %v128_v60 = vld [vmem:[%s806_s1 + $0x2f0] sm:$0xff] }
  0x15   :  { %169 = vmatpush.msra.mxu1 %v56_v30  ;;  %207 = vmatpush.msra.mxu3 %v90_v40  ;;  %v69_v57 = vld [vmem:[%s806_s1 + $0x118] sm:$0xff]  ;;  %v68_v61 = vld [vmem:[%s806_s1 + $0x110] sm:$0xff]  ;;  %v111_v63 = vld [vmem:[%s806_s1 + $0x268] sm:$0xff] }
  0x16   :  { %150 = vmatpush.msra.mxu0 %v39_v33  ;;  %188 = vmatpush.msra.mxu2 %v73_v39  ;;  %v85_v62 = vld [vmem:[%s806_s1 + $0x198] sm:$0xff]  ;;  %v110_v0 = vld [vmem:[%s806_s1 + $0x260] sm:$0xff]  ;;  %v127_v1 = vld [vmem:[%s806_s1 + $0x2e8] sm:$0xff] }
  0x17   :  { %170 = vmatpush.msra.mxu1 %v55_v34  ;;  %208 = vmatpush.msra.mxu3 %v89_v44  ;;  %v126_v2 = vld [vmem:[%s806_s1 + $0x2e0] sm:$0xff]  ;;  %v67_v3 = vld [vmem:[%s806_s1 + $0x108] sm:$0xff]  ;;  %v84_v4 = vld [vmem:[%s806_s1 + $0x190] sm:$0xff] }
  0x18   :  { %151 = vmatpush.msra.mxu0 %v38_v37  ;;  %189 = vmatpush.msra.mxu2 %v72_v43  ;;  %v66_v5 = vld [vmem:[%s806_s1 + $0x100] sm:$0xff]  ;;  %v83_v6 = vld [vmem:[%s806_s1 + $0x188] sm:$0xff] }
  0x19   :  { %171 = vmatpush.msra.mxu1 %v54_v38  ;;  %209 = vmatpush.msra.mxu3 %v88_v48 }
  0x1a   :  { %152 = vmatpush.msra.mxu0 %v37_v41  ;;  %190 = vmatpush.msra.mxu2 %v71_v47 }
  0x1b   :  { %172 = vmatpush.msra.mxu1 %v53_v42  ;;  %210 = vmatpush.msra.mxu3 %v87_v52 }
  0x1c   :  { %153 = vmatpush.msra.mxu0 %v36_v45  ;;  %191 = vmatpush.msra.mxu2 %v70_v51 }
  0x1d   :  { %173 = vmatpush.msra.mxu1 %v52_v46  ;;  %211 = vmatpush.msra.mxu3 %v86_v58 }
  0x1e   :  { %154 = vmatpush.msra.mxu0 %v35_v49  ;;  %192 = vmatpush.msra.mxu2 %v69_v57 }
  0x1f   :  { %174 = vmatpush.msra.mxu1 %v51_v50  ;;  %212 = vmatpush.msra.mxu3 %v85_v62 }
  0x20   :  { %155 = vmatpush.msra.mxu0 %v34_v53  ;;  %193 = vmatpush.msra.mxu2 %v68_v61 }
  0x21   :  { %175 = vmatpush.msra.mxu1 %v50_v54 }
  0x22   :  { %220 = vmatpush.msrb.mxu0 %v113_v55 }
  0x23   :  { %240 = vmatpush.msrb.mxu1 %v129_v56 }
  0x24   :  { %221 = vmatpush.msrb.mxu0 %v112_v59 }
  0x25   :  { %241 = vmatpush.msrb.mxu1 %v128_v60 }
  0x26   :  { %222 = vmatpush.msrb.mxu0 %v111_v63 }
  0x27   :  { %242 = vmatpush.msrb.mxu1 %v127_v1 }
  0x28   :  { %12 = vsyncpa [#allocation3], 0  ;;  %v109_v7 = vld [vmem:[%s806_s1 + $0x258] sm:$0xff]  ;;  %194 = vmatpush.msra.mxu2 %v67_v3  ;;  %213 = vmatpush.msra.mxu3 %v84_v4  ;;  %v29_v9 = vld [vmem:[%s805_s0 + $0x10] sm:$0xff]  ;;  %vm136_vm0 = vcmask 130048   ;;  %vm340_vm1 = vcmask 80896  }
  0x29   :  { %v125_v8 = vld [vmem:[%s806_s1 + $0x2d8] sm:$0xff]  ;;  %223 = vmatpush.msrb.mxu0 %v110_v0  ;;  %243 = vmatpush.msrb.mxu1 %v126_v2  ;;  %v82_v10 = vld [vmem:[%s806_s1 + $0x180] sm:$0xff]  ;;  %v108_v11 = vld [vmem:[%s806_s1 + $0x250] sm:$0xff]  ;;  %s373_s15 = sshll.u32 %s812_s7, 4  ;;  %s374_s15 = int_to_ptr.hbm [resolvable:$true] %s373_s15 }
  0x2a   :  { %v124_v12 = vld [vmem:[%s806_s1 + $0x2d0] sm:$0xff]  ;;  %195 = vmatpush.msra.mxu2 %v66_v5  ;;  %214 = vmatpush.msra.mxu3 %v83_v6  ;;  %v131_v13 = vld [vmem:[%s806_s1 + $0x308] sm:$0xff]  ;;  %v27_v14 = vld [vmem:[%s805_s0] sm:$0xff] }
  0x2b   :  { %224 = vmatpush.msrb.mxu0 %v109_v7  ;;  %244 = vmatpush.msrb.mxu1 %v125_v8  ;;  %v107_v15 = vld [vmem:[%s806_s1 + $0x248] sm:$0xff]  ;;  %v30_v17 = vld [vmem:[%s805_s0 + $0x18] sm:$0xff]  ;;  %v106_v19 = vld [vmem:[%s806_s1 + $0x240] sm:$0xff] }
  0x2c   :  { %v123_v16 = vld [vmem:[%s806_s1 + $0x2c8] sm:$0xff]  ;;  %196 = vmatmul.f32.vlgmr.msra.gmra.mxu2 %v29_v9  ;;  %215 = vmatpush.msra.mxu3 %v82_v10  ;;  %v122_v20 = vld [vmem:[%s806_s1 + $0x2c0] sm:$0xff]  ;;  %v105_v22 = vld [vmem:[%s806_s1 + $0x238] sm:$0xff] }
  0x2d   :  { %225 = vmatpush.msrb.mxu0 %v108_v11  ;;  %245 = vmatpush.msrb.mxu1 %v124_v12  ;;  %v28_v18 = vld [vmem:[%s805_s0 + $0x8] sm:$0xff]  ;;  %v130_v21 = vld [vmem:[%s806_s1 + $0x300] sm:$0xff]  ;;  %v121_v23 = vld [vmem:[%s806_s1 + $0x2b8] sm:$0xff] }
  0x2e   :  { %274 = vmatpush.msrb.mxu2 %v131_v13  ;;  %156 = vmatmul.f32.vlgmr.msra.gmra.mxu0 %v27_v14  ;;  %v33_v24 = vld [vmem:[%s805_s0 + $0x30] sm:$0xff]  ;;  %v103_v27 = vld [vmem:[%s806_s1 + $0x228] sm:$0xff]  ;;  %v102_v29 = vld [vmem:[%s806_s1 + $0x220] sm:$0xff] }
  0x2f   :  { %226 = vmatpush.msrb.mxu0 %v107_v15  ;;  %246 = vmatpush.msrb.mxu1 %v123_v16  ;;  %v104_v25 = vld [vmem:[%s806_s1 + $0x230] sm:$0xff]  ;;  %v119_v28 = vld [vmem:[%s806_s1 + $0x2a8] sm:$0xff]  ;;  %v118_v30 = vld [vmem:[%s806_s1 + $0x2a0] sm:$0xff] }
  0x30   :  { %216 = vmatmul.f32.vlgmr.msra.gmra.mxu3 %v30_v17  ;;  %176 = vmatmul.f32.vlgmr.msra.gmra.mxu1 %v28_v18  ;;  %v120_v26 = vld [vmem:[%s806_s1 + $0x2b0] sm:$0xff]  ;;  %v101_v31 = vld [vmem:[%s806_s1 + $0x218] sm:$0xff]  ;;  %v99_v35 = vld [vmem:[%s806_s1 + $0x208] sm:$0xff] }
  0x31   :  { %227 = vmatpush.msrb.mxu0 %v106_v19  ;;  %247 = vmatpush.msrb.mxu1 %v122_v20  ;;  %v117_v32 = vld [vmem:[%s806_s1 + $0x298] sm:$0xff]  ;;  %v100_v33 = vld [vmem:[%s806_s1 + $0x210] sm:$0xff]  ;;  %v115_v36 = vld [vmem:[%s806_s1 + $0x288] sm:$0xff] }
  0x32   :  { %275 = vmatpush.msrb.mxu2 %v130_v21  ;;  %v116_v34 = vld [vmem:[%s806_s1 + $0x290] sm:$0xff]  ;;  %v98_v37 = vld [vmem:[%s806_s1 + $0x200] sm:$0xff]  ;;  %v32_v40 = vld [vmem:[%s805_s0 + $0x28] sm:$0xff] }
  0x33   :  { %228 = vmatpush.msrb.mxu0 %v105_v22  ;;  %248 = vmatpush.msrb.mxu1 %v121_v23  ;;  %v114_v38 = vld [vmem:[%s806_s1 + $0x280] sm:$0xff]  ;;  %v282_v41 = vld [vmem:[%s808_s3 + $0x8] sm:$0xff] }
  0x34   :  { %382 = vmatmul.msk.f32.vlgmr.msrb.gmra.mxu2 %vm136_vm0, %v33_v24  ;;  %v31_v39 = vld [vmem:[%s805_s0 + $0x20] sm:$0xff]  ;;  %304 = vmatpush.msrb.mxu3 %v282_v41  ;;  %v312_v43 = vld [vmem:[%s810_s5 + $0x8] sm:$0xff] }
  0x35   :  { %229 = vmatpush.msrb.mxu0 %v104_v25  ;;  %249 = vmatpush.msrb.mxu1 %v120_v26  ;;  %v281_v42 = vld [vmem:[%s808_s3] sm:$0xff] }
  0x36   :  { %305 = vmatpush.msrb.mxu3 %v281_v42  ;;  %334 = vmatpush.msra.mxu2 %v312_v43  ;;  %v386_v44 = vld [vmem:[%s807_s2] ss:$0 sm:$0xff] }
  0x37   :  { %230 = vmatpush.msrb.mxu0 %v103_v27  ;;  %250 = vmatpush.msrb.mxu1 %v119_v28  ;;  %v311_v60 = vld [vmem:[%s810_s5] sm:$0xff] }
  0x38   :  { %335 = vmatpush.msra.mxu2 %v311_v60  ;;  %v387_v61 = vld [vmem:[%s809_s4] ss:$0 sm:$0xff]  ;;  %s419_s4 = smov [#allocation2]  }
  0x39   :  { %231 = vmatpush.msrb.mxu0 %v102_v29  ;;  %251 = vmatpush.msrb.mxu1 %v118_v30  ;;  %v388_v1 = vld [vmem:[%s811_s6] ss:$0 sm:$0xff]  ;;  %s371_s5 = sshll.u32 %s419_s4, 4  ;;  %s372_s5 = int_to_ptr.vmem [resolvable:$true] %s371_s5 }
  0x3b   :  { %232 = vmatpush.msrb.mxu0 %v101_v31  ;;  %252 = vmatpush.msrb.mxu1 %v117_v32 }
  0x3d   :  { %233 = vmatpush.msrb.mxu0 %v100_v33  ;;  %253 = vmatpush.msrb.mxu1 %v116_v34 }
  0x3f   :  { %234 = vmatpush.msrb.mxu0 %v99_v35  ;;  %254 = vmatpush.msrb.mxu1 %v115_v36 }
  0x41   :  { %235 = vmatpush.msrb.mxu0 %v98_v37  ;;  %255 = vmatpush.msrb.mxu1 %v114_v38 }
  0x42   :  { %236 = vmatmul.f32.vlgmr.msrb.gmra.mxu0 %v31_v39  ;;  %256 = vmatmul.f32.vlgmr.msrb.gmra.mxu1 %v32_v40 }
  0xab   :  { %v157_v45 = vpop.f32.mrf.mxu0 }
  0xac   :  { %v158_v46 = vadd.f32 %v386_v44, %v157_v45 }
  0xad   :  { %v177_v47 = vpop.f32.mrf.mxu1 }
  0xae   :  { %v178_v48 = vadd.f32 %v177_v47, %v158_v46 }
  0xaf   :  { %v197_v49 = vpop.f32.mrf.mxu2 }
  0xb0   :  { %v198_v50 = vadd.f32 %v197_v49, %v178_v48 }
  0xb3   :  { %v217_v51 = vpop.f32.mrf.mxu3 }
  0xb4   :  { %v218_v52 = vadd.f32 %v217_v51, %v198_v50 }
  0xb7   :  { %v277_v56 = vpop.f32.mrf.mxu2 }
  0xbf   :  { %v237_v53 = vpop.f32.mrf.mxu0  ;;  %v257_v54 = vpop.f32.mrf.mxu1 }
  0xc0   :  { %v238_v55 = vadd.f32 %v237_v53, %v218_v52 }
  0xc2   :  { %v258_v57 = vadd.f32 %v257_v54, %v238_v55 }
  0xc4   :  { %v278_v58 = vadd.f32 %v277_v56, %v258_v57 }
  0xc6   :  { %v280_v59 = vmax.f32 %v278_v58, 0.0 }
  0xc8   :  { %383 = vmatmul.msk.f32.vlgmr.msrb.gmra.mxu3 %vm136_vm0, %v280_v59 }
 0x14b   :  { %v307_v62 = vpop.f32.mrf.mxu3 }
 0x14c   :  { %v308_v63 = vadd.f32 %v387_v61, %v307_v62 }
 0x14e   :  { %v310_v0 = vmax.f32 %v308_v63, 0.0 }
 0x150   :  { %384 = vmatmul.msk.f32.vlgmr.msra.gmra.mxu2 %vm136_vm0, %v310_v0 }
 0x1d3   :  { %v337_v2 = vpop.f32.mrf.mxu2 }
 0x1d4   :  { %v338_v3 = vadd.f32 %v388_v1, %v337_v2 }
 0x1d6   :  { %v341_v4 = vsel %vm340_vm1, %v338_v3, -inf }
 0x1d7   :  { %342 = vmax.xlane.f32.xlu0 %v341_v4 }
 0x24a   :  { %v343_v5 = vpop.xlane.xlu0 %342 }
 0x24b   :  { %v344_v6 = vsub.f32 %v338_v3, %v343_v5 }
 0x24d   :  { %v345_v7 = vmul.f32 1.442695, %v344_v6 }
 0x24f   :  { %389 = vpow2.f32 %v345_v7 }
 0x255   :  { %v390_v8 = vpop.eup %389 }
 0x256   :  { %v347_v9 = vsel %vm340_vm1, %v390_v8, 0.0 }
 0x257   :  { %348 = vadd.xlane.f32.xlu0 %v347_v9 }
 0x2ca   :  { %v349_v10 = vpop.xlane.xlu0 %348 }
 0x2cb   :  { %391 = vrcp.f32 %v349_v10  ;;  %v361_v14 = vand.u32 2147483648, %v349_v10  ;;  %v359_v16 = vand.u32 2147483647, %v349_v10  ;;  %vm355_vm3 = vweird.f32 %v349_v10 }
 0x2cd   :  { %v362_v18 = vor.u32 1.1754944e-38, %v361_v14  ;;  %vm360_vm5 = vcmp.eq.f32.partialorder %v359_v16, 8.507059e+37 }
 0x2d1   :  { %v392_v11 = vpop.eup %391 }
 0x2d2   :  { %v351_v12 = vmul.f32 %v392_v11, %v349_v10  ;;  %vm356_vm2 = vweird.f32 %v392_v11 }
 0x2d3   :  { %vm357_vm4 = vmor %vm355_vm3, %vm356_vm2 }
 0x2d4   :  { %v352_v13 = vsub.f32 1.0, %v351_v12 }
 0x2d6   :  { %v353_v15 = vmul.f32 %v392_v11, %v352_v13 }
 0x2d8   :  { %v354_v17 = vadd.f32 %v392_v11, %v353_v15 }
 0x2da   :  { %v358_v19 = vsel %vm357_vm4, %v392_v11, %v354_v17 }
 0x2db   :  { %v363_v20 = vsel %vm360_vm5, %v362_v18, %v358_v19 }
 0x2dc   :  { %v364_v21 = vmul.f32 %v390_v8, %v363_v20 }
 0x2de   :  { %365 = vst.msk [vmem:[#allocation2] sm:$0xff] %vm340_vm1, %v364_v21 }
 0x2df   :  { %376 = dma.vmem_to_hbm [thread:$0]  %s372_s5, 128, %s374_s15, [#allocation3]  }
 0x2e0   :  { %417 = dma.done.wait [#allocation3], 128  }
 0x2e1   :  { %418 = vsyncadd [#allocation3], 4294967168 }
 0x2e2   :  { %381 = vsyncpa [#allocation3], 1 }

</bundles_post_ra>
